<compile_context>
chip_gen: v5e
topology: v5e:2x2
jax: 0.10.0
libtpu: 0.0.40
codegen_flags: <defaults>
</compile_context>

<pallas_src>
import functools

import jax
import jax.numpy as jnp
from jax import lax
from jax.experimental import pallas as pl
from jax.experimental.pallas import tpu as pltpu


def _sine_activation_kernel(in_features, pos_ref, w_ref, b_ref, out_ref):
    pos = pos_ref[...]                        # (T, in)
    w = w_ref[...]                            # (in, N)   fused [w | w0]
    t, n = pos.shape[0], w.shape[1]

    # lin[t, n] = sum_i pos[t, i] * w[i, n] + b[n]   (VPU broadcast MACs;
    # in_features is a small static constant, so this unrolls fully).
    lin = jnp.broadcast_to(b_ref[...], (t, n))
    for i in range(in_features):
        lin = lin + pos[:, i:i + 1] * w[i:i + 1, :]

    # sin on the first out_features-1 lanes, identity on the last lane
    # (matches torch.cat([sin(pos @ w + b), pos @ w0 + b0], -1)).
    lane = lax.broadcasted_iota(jnp.int32, (t, n), 1)
    table = jnp.where(lane < n - 1, jnp.sin(lin), lin)   # (T, N)

    # einops.repeat('t n -> b t n'): broadcast the table across this slab's
    # batch_tile rows and store the whole lane-dense block in one go.
    out_ref[...] = jnp.broadcast_to(table[None], out_ref.shape)


def sine_activation(B, pos_ids, params, *, batch_tile=None):
    """pos_ids: (n_shot, in_features) f32.  Returns (B, n_shot, out_features)."""
    n_shot, in_features = pos_ids.shape
    out_features = params["w"].shape[1] + 1

    # Fuse [w | w0] -> (in, out) and [b | b0] -> (1, out) so the kernel writes
    # one lane-dense slab.
    w_fused = jnp.concatenate([params["w"], params["w0"]], axis=1)
    b_fused = jnp.concatenate([params["b"], params["b0"]])[None, :]

    if batch_tile is None:
        # Keep each output slab comfortably inside VMEM (~2 MiB budget,
        # double-buffered by the pipeline), but never exceed B.
        slab_bytes = max(n_shot * out_features * 4, 1)
        batch_tile = max(1, min(B, (2 << 20) // slab_bytes))
    # Use the largest tile <= batch_tile that divides B exactly (no partial
    # trailing block; worst case falls back to 1).
    while B % batch_tile:
        batch_tile -= 1
    grid = (B // batch_tile,)

    kernel = functools.partial(_sine_activation_kernel, in_features)

    return pl.pallas_call(
        kernel,
        out_shape=jax.ShapeDtypeStruct((B, n_shot, out_features), jnp.float32),
        grid=grid,
        in_specs=[
            pl.BlockSpec((n_shot, in_features), lambda b: (0, 0)),
            pl.BlockSpec((in_features, out_features), lambda b: (0, 0)),
            pl.BlockSpec((1, out_features), lambda b: (0, 0)),
        ],
        out_specs=pl.BlockSpec(
            (batch_tile, n_shot, out_features), lambda b: (b, 0, 0)),
        compiler_params=pltpu.CompilerParams(
            dimension_semantics=("parallel",)),
    )(pos_ids, w_fused, b_fused)


# ---------------- pure-JAX reference (mirrors the PyTorch forward) ----------


def reference(B, pos_ids, params):
    v1 = jnp.sin(pos_ids @ params["w"] + params["b"])
    v2 = pos_ids @ params["w0"] + params["b0"]
    v = jnp.concatenate([v1, v2], axis=-1)
    return jnp.broadcast_to(v[None], (B,) + v.shape)


# ---------------- deterministic parameter init + driver ---------------------


if __name__ == "__main__":
    B, IN_FEATURES, OUT_FEATURES, N_SHOT = 2, 1, 256, 20

    key = jax.random.PRNGKey(0)
    k0, k1, k2, k3 = jax.random.split(key, 4)

    params = {
        "w0": jax.random.normal(k0, (IN_FEATURES, 1), jnp.float32),
        "b0": jax.random.normal(k1, (1,), jnp.float32),
        "w": jax.random.normal(k2, (IN_FEATURES, OUT_FEATURES - 1), jnp.float32),
        "b": jax.random.normal(k3, (OUT_FEATURES - 1,), jnp.float32),
    }
    # self.pos_ids = torch.arange(n_shot)[:, None]
    pos_ids = jnp.arange(N_SHOT, dtype=jnp.float32)[:, None]

    out = sine_activation(B, pos_ids, params)
    out = jax.block_until_ready(out)

    ref = reference(B, pos_ids, params)
    err = float(jnp.max(jnp.abs(out - ref)))
    assert out.shape == (B, N_SHOT, OUT_FEATURES), out.shape
    assert err < 1e-4, f"mismatch vs reference: max abs err = {err}"

    print("KERNEL_OK")
</pallas_src>

<mosaic_0001>
module attributes {stable_mosaic.version = 11 : i64} {
  func.func @_sine_activation_kernel(%arg0: i32, %arg1: memref<20x1xf32, #tpu.memory_space<vmem>>, %arg2: memref<1x256xf32, #tpu.memory_space<vmem>>, %arg3: memref<1x256xf32, #tpu.memory_space<vmem>>, %arg4: memref<2x20x256xf32, #tpu.memory_space<vmem>>) attributes {dimension_semantics = [#tpu.dimension_semantics<parallel>], iteration_bounds = array<i64: 1>, scalar_prefetch = 0 : i64, scratch_operands = 0 : i64, tpu.core_type = #tpu.core_type<tc>, window_params = [{pipeline_mode = #tpu.pipeline_mode<synchronous>, transform_indices = @transform_0, window_bounds = array<i64: 20, 1>}, {pipeline_mode = #tpu.pipeline_mode<synchronous>, transform_indices = @transform_1, window_bounds = array<i64: 1, 256>}, {pipeline_mode = #tpu.pipeline_mode<synchronous>, transform_indices = @transform_2, window_bounds = array<i64: 1, 256>}, {transform_indices = @transform_3, window_bounds = array<i64: 2, 20, 256>}]} {
    %c0 = arith.constant 0 : index
    %c0_0 = arith.constant 0 : index
    %0 = vector.load %arg1[%c0, %c0_0] : memref<20x1xf32, #tpu.memory_space<vmem>>, vector<20x1xf32>
    %c0_1 = arith.constant 0 : index
    %c0_2 = arith.constant 0 : index
    %1 = vector.load %arg2[%c0_1, %c0_2] : memref<1x256xf32, #tpu.memory_space<vmem>>, vector<1x256xf32>
    %c0_3 = arith.constant 0 : index
    %c0_4 = arith.constant 0 : index
    %2 = vector.load %arg3[%c0_3, %c0_4] : memref<1x256xf32, #tpu.memory_space<vmem>>, vector<1x256xf32>
    %3 = vector.shape_cast %2 : vector<1x256xf32> to vector<1x256xf32>
    %4 = vector.broadcast %3 : vector<1x256xf32> to vector<20x256xf32>
    %5 = vector.broadcast %0 : vector<20x1xf32> to vector<20x256xf32>
    %6 = vector.broadcast %1 : vector<1x256xf32> to vector<20x256xf32>
    %7 = arith.mulf %5, %6 : vector<20x256xf32>
    %8 = arith.addf %4, %7 : vector<20x256xf32>
    %9 = tpu.iota {dimensions = array<i32: 1>} : vector<20x256xi32>
    %c255_i32 = arith.constant 255 : i32
    %10 = vector.broadcast %c255_i32 : i32 to vector<20x256xi32>
    %11 = arith.cmpi slt, %9, %10 : vector<20x256xi32>
    %12 = math.sin %8 : vector<20x256xf32>
    %13 = arith.select %11, %12, %8 : vector<20x256xi1>, vector<20x256xf32>
    %14 = vector.shape_cast %13 : vector<20x256xf32> to vector<1x20x256xf32>
    %15 = vector.shape_cast %14 : vector<1x20x256xf32> to vector<1x20x256xf32>
    %16 = vector.broadcast %15 : vector<1x20x256xf32> to vector<2x20x256xf32>
    %c0_5 = arith.constant 0 : index
    %c0_6 = arith.constant 0 : index
    %c0_7 = arith.constant 0 : index
    %17 = vector.load %arg4[%c0_5, %c0_6, %c0_7] : memref<2x20x256xf32, #tpu.memory_space<vmem>>, vector<2x20x256xf32>
    tpu.vector_store %arg4[%c0_5, %c0_6, %c0_7], %16 {strides = array<i32>} : memref<2x20x256xf32, #tpu.memory_space<vmem>>, vector<2x20x256xf32>,
    return
  }
  func.func @transform_0(%arg0: i32) -> (i32, i32) {
    %c0_i32 = arith.constant 0 : i32
    %c0_i32_0 = arith.constant 0 : i32
    %c0_i32_1 = arith.constant 0 : i32
    return %c0_i32, %c0_i32_0 : i32, i32
  }
  func.func @transform_1(%arg0: i32) -> (i32, i32) {
    %c0_i32 = arith.constant 0 : i32
    %c0_i32_0 = arith.constant 0 : i32
    %c0_i32_1 = arith.constant 0 : i32
    return %c0_i32, %c0_i32_0 : i32, i32
  }
  func.func @transform_2(%arg0: i32) -> (i32, i32) {
    %c0_i32 = arith.constant 0 : i32
    %c0_i32_0 = arith.constant 0 : i32
    %c0_i32_1 = arith.constant 0 : i32
    return %c0_i32, %c0_i32_0 : i32, i32
  }
  func.func @transform_3(%arg0: i32) -> (i32, i32, i32) {
    %c0_i32 = arith.constant 0 : i32
    %c0_i32_0 = arith.constant 0 : i32
    %c0_i32_1 = arith.constant 0 : i32
    return %arg0, %c0_i32, %c0_i32_0 : i32, i32, i32
  }
}

</mosaic_0001>

<bundles_post_ra>
// kernel: tpu_custom_call.1
= control target key start
LH: loop header
LB: loop body
LE: loop exit
PB: predicated region body
PF: predicated region fallthrough
CT: control target
= control target key end

     0   :  { %v1040_v0 = vmov 0   ;;  %v1041_v49 = vmov 683565275   ;;  %v1042_v51 = vmov 2475754826   ;;  %s1769_s0 = inlined_call_operand.vmem [shape: f32[20,1], index: 0, kind: input, shape index: {}]   ;;  %s1770_s1 = inlined_call_operand.vmem [shape: f32[1,256], index: 1, kind: input, shape index: {}]   ;;  %s1771_s2 = inlined_call_operand.vmem [shape: f32[1,256], index: 2, kind: input, shape index: {}]   ;;  %s1772_s3 = inlined_call_operand.vmem [shape: f32[2,20,256], index: 3, kind: output, shape index: {}]  }
   0x1   :  { %1039 = vset.pattern.permute.xlu1 %v1040_v0  ;;  %1038 = vset.pattern.permute.xlu0 %v1040_v0  ;;  %v16_v1 = vld [vmem:[%s1769_s0 + $0x10] sm:$0xf]  ;;  %v14_v2 = vld [vmem:[%s1769_s0] sm:$0xff]  ;;  %v15_v3 = vld [vmem:[%s1769_s0 + $0x8] sm:$0xff]  ;;  %v1043_v55 = vmov 2131351028  }
   0x2   :  { %36 = vperm.xlu1 %1039, %v16_v1   ;;  %26 = vperm.xlu0 %1038, %v14_v2   ;;  %v17_v4 = vld [vmem:[%s1770_s1] sm:$0x3]  ;;  %v1044_v58 = vmov 2102212464   ;;  %v1045_v61 = vmov 920167782  }
   0x3   :  { %v18_v5 = vld [vmem:[%s1771_s2] sm:$0x3]  ;;  %v40_v6 = vperm.slane %v17_v4, 0  ;;  %v41_v7 = vperm.slane %v17_v4, 1  ;;  %v1046_v1 = vmov 1326507024  }
   0x4   :  { %v20_v8 = vperm.slane %v18_v5, 0  ;;  %v21_v9 = vperm.slane %v18_v5, 1 }
   0xa   :  { %31 = vperm.xlu0 %1038, %v15_v3  }
  0x74   :  { %v37_v10 = vpop.permute.xlu1 %36  ;;  %v27_v11 = vpop.permute.xlu0 %26 }
  0x75   :  { %v44_v12 = vmul.f32 %v40_v6, %v27_v11  ;;  %v45_v13 = vmul.f32 %v41_v7, %v27_v11  ;;  %v48_v14 = vmul.f32 %v40_v6, %v37_v10  ;;  %v49_v15 = vmul.f32 %v41_v7, %v37_v10 }
  0x77   :  { %v1084_v16 = vadd.f32 %v44_v12, %v20_v8  ;;  %v1086_v17 = vadd.f32 %v45_v13, %v21_v9  ;;  %v1088_v18 = vadd.f32 %v48_v14, %v20_v8  ;;  %v1090_v19 = vadd.f32 %v49_v15, %v21_v9 }
  0x79   :  { %v61_v20 = vand.u32 2147483647, %v1084_v16  ;;  %v64_v21 = vand.u32 2139095040, %v1084_v16  ;;  %v216_v22 = vand.u32 2147483647, %v1086_v17  ;;  %v219_v23 = vand.u32 2139095040, %v1086_v17 }
  0x7b   :  { %v65_v24 = vshrl.u32 %v64_v21, 23  ;;  %v68_v25 = vand.u32 8388607, %v61_v20  ;;  %v220_v27 = vshrl.u32 %v219_v23, 23  ;;  %v223_v28 = vand.u32 8388607, %v216_v22 }
  0x7c   :  { %v32_v26 = vpop.permute.xlu0 %31 }
  0x7d   :  { %v47_v29 = vmul.f32 %v41_v7, %v32_v26  ;;  %v1013_v30 = vadd.s32 4294967169, %v65_v24  ;;  %v69_v31 = vor.u32 8388608, %v68_v25  ;;  %v1016_v32 = vadd.s32 4294967169, %v220_v27 }
  0x7e   :  { %v224_v33 = vor.u32 8388608, %v223_v28  ;;  %v46_v36 = vmul.f32 %v40_v6, %v32_v26 }
  0x7f   :  { %v1100_v34 = vadd.f32 %v47_v29, %v21_v9  ;;  %v71_v35 = vadd.s32 1, %v1013_v30  ;;  %v226_v37 = vadd.s32 1, %v1016_v32  ;;  %v1102_v38 = vshll.u32 %v69_v31, 8 }
  0x80   :  { %v1104_v40 = vshll.u32 %v224_v33, 8  ;;  %v1106_v43 = vadd.f32 %v46_v36, %v20_v8 }
  0x81   :  { %vm72_vm0 = vcmp.gt.s32.totalorder %v71_v35, 0  ;;  %vm227_vm1 = vcmp.gt.s32.totalorder %v226_v37, 0  ;;  %v1109_v45 = vand.u32 65535, %v1102_v38  ;;  %v1112_v46 = vshrl.u32 %v1102_v38, 16 }
  0x82   :  { %v73_v39 = vsel %vm72_vm0, %v71_v35, 0  ;;  %v228_v42 = vsel %vm227_vm1, %v226_v37, 0  ;;  %v1121_v53 = vand.u32 65535, %v1104_v40 }
  0x83   :  { %v75_v41 = vand.u32 31, %v73_v39  ;;  %v1114_v47 = vand.u32 31, %v228_v42  ;;  %v1116_v48 = vshrl.u32 %v73_v39, 5  ;;  %v1163_v36 = vshrl.u32 %v228_v42, 5 }
  0x85   :  { %v76_v44 = vsub.s32 32, %v75_v41  ;;  %v78_v50 = vshll.u32 %v1041_v49, %v75_v41  ;;  %v81_v52 = vshll.u32 %v1042_v51, %v75_v41  ;;  %v84_v57 = vshll.u32 %v1043_v55, %v75_v41 }
  0x86   :  { %v87_v60 = vshll.u32 %v1044_v58, %v75_v41  ;;  %v90_v63 = vshll.u32 %v1045_v61, %v75_v41  ;;  %v1132_v6 = vsub.s32 32, %v1114_v47  ;;  %vm93_vm2 = vcmp.lt.s32.totalorder %v1116_v48, 1 }
  0x87   :  { %v79_v54 = vshrl.u32 %v1042_v51, %v76_v44  ;;  %v82_v56 = vshrl.u32 %v1043_v55, %v76_v44  ;;  %v85_v59 = vshrl.u32 %v1044_v58, %v76_v44  ;;  %v88_v62 = vshrl.u32 %v1045_v61, %v76_v44 }
  0x88   :  { %v91_v2 = vshrl.u32 %v1046_v1, %v76_v44  ;;  %vm94_vm3 = vcmp.lt.s32.totalorder %v1116_v48, 2  ;;  %v77_v9 = vshrl.u32 %v1041_v49, %v76_v44  ;;  %vm96_vm4 = vcmp.lt.s32.totalorder %v1116_v48, 4 }
  0x89   :  { %v80_v3 = vor.u32 %v79_v54, %v78_v50  ;;  %v83_v4 = vor.u32 %v82_v56, %v81_v52  ;;  %v86_v5 = vor.u32 %v85_v59, %v84_v57  ;;  %v89_v7 = vor.u32 %v88_v62, %v87_v60 }
  0x8a   :  { %v92_v8 = vor.u32 %v91_v2, %v90_v63  ;;  %vm95_vm5 = vcmp.lt.s32.totalorder %v1116_v48, 3  ;;  %v233_v14 = vshll.u32 %v1041_v49, %v1114_v47  ;;  %v234_v24 = vshrl.u32 %v1042_v51, %v1132_v6 }
  0x8b   :  { %v101_v10 = vsel %vm93_vm2, %v80_v3, %v83_v4  ;;  %v105_v11 = vsel %vm93_vm2, %v83_v4, %v86_v5  ;;  %v102_v12 = vsel %vm96_vm4, %v89_v7, 920167782  ;;  %v98_v15 = vsel %vm96_vm4, %v86_v5, 2102212464 }
  0x8c   :  { %v106_v13 = vsel %vm96_vm4, %v92_v8, 1326507024  ;;  %v103_v21 = vsel %vm95_vm5, %v86_v5, %v102_v12  ;;  %v236_v27 = vshll.u32 %v1042_v51, %v1114_v47  ;;  %v237_v28 = vshrl.u32 %v1043_v55, %v1132_v6 }
  0x8d   :  { %v107_v23 = vsel %vm95_vm5, %v89_v7, %v106_v13  ;;  %v104_v25 = vsel %vm94_vm3, %v101_v10, %v103_v21  ;;  %v97_v33 = vsel %vm93_vm2, %v77_v9, %v80_v3  ;;  %v99_v35 = vsel %vm95_vm5, %v83_v4, %v98_v15 }
  0x8e   :  { %v108_v26 = vsel %vm94_vm3, %v105_v11, %v107_v23  ;;  %v134_v31 = vand.u32 65535, %v104_v25  ;;  %v135_v32 = vshrl.u32 %v104_v25, 16  ;;  %v1165_v37 = vor.u32 %v234_v24, %v233_v14 }
  0x8f   :  { %v112_v29 = vand.u32 65535, %v108_v26  ;;  %v113_v30 = vshrl.u32 %v108_v26, 16  ;;  %v1169_v44 = vor.u32 %v237_v28, %v236_v27  ;;  %v240_v50 = vshrl.u32 %v1044_v58, %v1132_v6 }
  0x90   :  { %v137_v54 = vmul.u32 %v135_v32, %v1109_v45  ;;  %v138_v56 = vmul.u32 %v134_v31, %v1112_v46  ;;  %v239_v42 = vshll.u32 %v1043_v55, %v1114_v47  ;;  %v136_v60 = vmul.u32 %v134_v31, %v1109_v45 }
  0x91   :  { %v115_v39 = vmul.u32 %v113_v30, %v1109_v45  ;;  %v116_v41 = vmul.u32 %v112_v29, %v1112_v46  ;;  %v114_v52 = vmul.u32 %v112_v29, %v1109_v45  ;;  %v117_v57 = vmul.u32 %v113_v30, %v1112_v46 }
  0x92   :  { %v139_v62 = vmul.u32 %v135_v32, %v1112_v46  ;;  %v140_v4 = vshll.u32 %v137_v54, 16  ;;  %v142_v7 = vshll.u32 %v138_v56, 16  ;;  %v1181_v8 = vor.u32 %v240_v50, %v239_v42 }
  0x93   :  { %v118_v59 = vshll.u32 %v115_v39, 16  ;;  %v119_v63 = vshrl.u32 %v115_v39, 16  ;;  %v120_v2 = vshll.u32 %v116_v41, 16  ;;  %v121_v3 = vshrl.u32 %v116_v41, 16 }
  0x94   :  { %vm144_vm7 = vc.u32 %v136_v60, %v140_v4  ;;  %v146_v10 = vadd.s32 %v140_v4, %v136_v60  ;;  %v243_v11 = vshrl.u32 %v1045_v61, %v1132_v6  ;;  %v242_v46 = vshll.u32 %v1044_v58, %v1114_v47 }
  0x95   :  { %vm122_vm6 = vc.u32 %v114_v52, %v118_v59  ;;  %v124_v5 = vadd.s32 %v118_v59, %v114_v52  ;;  %v145_v45 = vsel %vm144_vm7, 1, %v1040_v0  ;;  %v245_v15 = vshll.u32 %v1045_v61, %v1114_v47 }
  0x96   :  { %v123_v9 = vsel %vm122_vm6, 1, %v1040_v0  ;;  %v147_v14 = vadd.s32 %v145_v45, %v139_v62  ;;  %vm148_vm9 = vc.u32 %v146_v10, %v142_v7  ;;  %v244_v24 = vor.u32 %v243_v11, %v242_v46 }
  0x97   :  { %v125_v12 = vadd.s32 %v123_v9, %v117_v57  ;;  %vm126_vm8 = vc.u32 %v124_v5, %v120_v2  ;;  %v149_v23 = vsel %vm148_vm9, 1, %v1040_v0  ;;  %v246_v25 = vshrl.u32 %v1046_v1, %v1132_v6 }
  0x98   :  { %v127_v13 = vsel %vm126_vm8, 1, %v1040_v0  ;;  %v141_v26 = vshrl.u32 %v137_v54, 16  ;;  %v143_v27 = vshrl.u32 %v138_v56, 16  ;;  %v1195_v28 = vadd.s32 %v146_v10, %v142_v7 }
  0x99   :  { %v129_v21 = vadd.s32 %v127_v13, %v125_v12  ;;  %v151_v29 = vadd.s32 %v149_v23, %v147_v14  ;;  %v247_v31 = vor.u32 %v246_v25, %v245_v15  ;;  %vm248_vm10 = vcmp.lt.s32.totalorder %v1163_v36, 1 }
  0x9a   :  { %vm251_vm11 = vcmp.lt.s32.totalorder %v1163_v36, 4  ;;  %vm250_vm12 = vcmp.lt.s32.totalorder %v1163_v36, 3  ;;  %v256_v47 = vsel %vm248_vm10, %v1165_v37, %v1169_v44  ;;  %vm249_vm13 = vcmp.lt.s32.totalorder %v1163_v36, 2 }
  0x9b   :  { %v130_v30 = vadd.s32 %v129_v21, %v119_v63  ;;  %v152_v32 = vadd.s32 %v151_v29, %v141_v26  ;;  %v257_v39 = vsel %vm251_vm11, %v244_v24, 920167782  ;;  %v260_v52 = vsel %vm248_vm10, %v1169_v44, %v1181_v8 }
  0x9c   :  { %v258_v50 = vsel %vm250_vm12, %v1181_v8, %v257_v39  ;;  %v100_v54 = vsel %vm94_vm3, %v97_v33, %v99_v35  ;;  %v261_v57 = vsel %vm251_vm11, %v247_v31, 1326507024  ;;  %v266_v60 = vshrl.u32 %v1104_v40, 16 }
  0x9d   :  { %v1206_v41 = vadd.s32 %v130_v30, %v121_v3  ;;  %v153_v56 = vadd.s32 %v152_v32, %v143_v27  ;;  %v259_v42 = vsel %vm249_vm13, %v256_v47, %v258_v50  ;;  %v262_v59 = vsel %vm250_vm12, %v244_v24, %v261_v57 }
  0x9e   :  { %v289_v62 = vand.u32 65535, %v259_v42  ;;  %v263_v48 = vsel %vm249_vm13, %v260_v52, %v262_v59  ;;  %v290_v33 = vshrl.u32 %v259_v42, 16  ;;  %v374_v35 = vand.u32 2139095040, %v1106_v43 }
  0x9f   :  { %vm156_vm14 = vc.u32 %v1206_v41, %v1195_v28  ;;  %v157_v63 = vadd.s32 1, %v153_v56  ;;  %v154_v2 = vmul.u32 %v1102_v38, %v100_v54  ;;  %v267_v3 = vand.u32 65535, %v263_v48 }
  0xa0   :  { %v268_v4 = vshrl.u32 %v263_v48, 16  ;;  %v292_v7 = vmul.u32 %v290_v33, %v1121_v53  ;;  %v293_v9 = vmul.u32 %v289_v62, %v266_v60  ;;  %v291_v45 = vmul.u32 %v289_v62, %v1121_v53 }
  0xa1   :  { %v158_v5 = vsel %vm156_vm14, %v157_v63, %v153_v56  ;;  %v271_v12 = vmul.u32 %v267_v3, %v266_v60  ;;  %v294_v46 = vmul.u32 %v290_v33, %v266_v60  ;;  %v375_v14 = vshrl.u32 %v374_v35, 23 }
  0xa2   :  { %v159_v10 = vadd.s32 %v158_v5, %v154_v2  ;;  %v270_v11 = vmul.u32 %v268_v4, %v1121_v53  ;;  %v295_v13 = vshll.u32 %v292_v7, 16  ;;  %v269_v21 = vmul.u32 %v267_v3, %v1121_v53 }
  0xa3   :  { %v272_v23 = vmul.u32 %v268_v4, %v266_v60  ;;  %v275_v24 = vshll.u32 %v271_v12, 16  ;;  %v297_v25 = vshll.u32 %v293_v9, 16  ;;  %v232_v53 = vshrl.u32 %v1041_v49, %v1132_v6 }
  0xa4   :  { %v160_v15 = vadd.s32 536870912, %v159_v10  ;;  %v273_v38 = vshll.u32 %v270_v11, 16  ;;  %vm299_vm15 = vc.u32 %v291_v45, %v295_v13  ;;  %v301_v26 = vadd.s32 %v295_v13, %v291_v45 }
  0xa5   :  { %v300_v30 = vsel %vm299_vm15, 1, %v1040_v0  ;;  %v253_v50 = vsel %vm251_vm11, %v1181_v8, 2102212464  ;;  %v1019_v56 = vadd.s32 4294967169, %v375_v14  ;;  %v274_v57 = vshrl.u32 %v270_v11, 16 }
  0xa6   :  { %v1235_v27 = vshrl.u32 %v160_v15, 30  ;;  %vm277_vm0 = vc.u32 %v269_v21, %v273_v38  ;;  %v279_v29 = vadd.s32 %v273_v38, %v269_v21  ;;  %v302_v32 = vadd.s32 %v300_v30, %v294_v46 }
  0xa7   :  { %v278_v31 = vsel %vm277_vm0, 1, %v1040_v0  ;;  %vm303_vm1 = vc.u32 %v301_v26, %v297_v25  ;;  %v252_v62 = vsel %vm248_vm10, %v232_v53, %v1165_v37  ;;  %v296_v6 = vshrl.u32 %v292_v7, 16 }
  0xa8   :  { %v162_v47 = vshll.u32 %v1235_v27, 30  ;;  %v280_v39 = vadd.s32 %v278_v31, %v272_v23  ;;  %vm281_vm2 = vc.u32 %v279_v29, %v275_v24  ;;  %v304_v54 = vsel %vm303_vm1, 1, %v1040_v0 }
  0xa9   :  { %v282_v52 = vsel %vm281_vm2, 1, %v1040_v0  ;;  %v306_v60 = vadd.s32 %v304_v54, %v302_v32  ;;  %v381_v63 = vadd.s32 1, %v1019_v56  ;;  %v276_v33 = vshrl.u32 %v271_v12, 16 }
  0xaa   :  { %v163_v42 = vsub.s32 %v159_v10, %v162_v47  ;;  %v284_v59 = vadd.s32 %v282_v52, %v280_v39  ;;  %v254_v8 = vsel %vm250_vm12, %v1169_v44, %v253_v50  ;;  %v298_v2 = vshrl.u32 %v293_v9, 16 }
  0xab   :  { %v307_v3 = vadd.s32 %v306_v60, %v296_v6  ;;  %vm382_vm4 = vcmp.gt.s32.totalorder %v381_v63, 0  ;;  %v371_v37 = vand.u32 2147483647, %v1106_v43  ;;  %v255_v12 = vsel %vm249_vm13, %v252_v62, %v254_v8 }
  0xac   :  { %vm164_vm3 = vcmp.lt.s32.totalorder %v163_v42, 0  ;;  %v165_v48 = vsub.s32 0, %v163_v42  ;;  %v285_v35 = vadd.s32 %v284_v59, %v274_v57  ;;  %v383_v10 = vsel %vm382_vm4, %v381_v63, 0 }
  0xad   :  { %v308_v45 = vadd.s32 %v307_v3, %v298_v2  ;;  %v385_v7 = vand.u32 31, %v383_v10  ;;  %v1258_v46 = vadd.s32 %v301_v26, %v297_v25  ;;  %v155_v9 = vadd.s32 %v1195_v28, %v1206_v41 }
  0xae   :  { %v166_v4 = vsel %vm164_vm3, %v165_v48, %v163_v42  ;;  %v1253_v5 = vadd.s32 %v285_v35, %v276_v33  ;;  %v309_v15 = vmul.u32 %v1104_v40, %v255_v12  ;;  %v378_v21 = vand.u32 8388607, %v371_v37 }
  0xaf   :  { %v167_v11 = vclz %v166_v4  ;;  %v312_v14 = vadd.s32 1, %v308_v45  ;;  %v1260_v44 = vsub.s32 32, %v385_v7  ;;  %v1269_v36 = vshrl.u32 %v383_v10, 5 }
  0xb0   :  { %vm311_vm5 = vc.u32 %v1253_v5, %v1258_v46  ;;  %v388_v38 = vshll.u32 %v1041_v49, %v385_v7  ;;  %v391_v29 = vshll.u32 %v1042_v51, %v385_v7  ;;  %v394_v30 = vshll.u32 %v1043_v55, %v385_v7 }
  0xb1   :  { %v1014_v13 = vadd.s32 4294967294, %v167_v11  ;;  %v389_v24 = vshrl.u32 %v1042_v51, %v1260_v44  ;;  %v392_v28 = vshrl.u32 %v1043_v55, %v1260_v44  ;;  %v313_v26 = vsel %vm311_vm5, %v312_v14, %v308_v45 }
  0xb2   :  { %v395_v40 = vshrl.u32 %v1044_v58, %v1260_v44  ;;  %v397_v31 = vshll.u32 %v1044_v58, %v385_v7  ;;  %v398_v32 = vshrl.u32 %v1045_v61, %v1260_v44  ;;  %v401_v50 = vshrl.u32 %v1046_v1, %v1260_v44 }
  0xb3   :  { %vm1015_vm6 = vcmp.lt.s32.totalorder %v1014_v13, 0  ;;  %v314_v52 = vadd.s32 %v313_v26, %v309_v15  ;;  %v1285_v54 = vor.u32 %v389_v24, %v388_v38  ;;  %v1287_v56 = vor.u32 %v392_v28, %v391_v29 }
  0xb4   :  { %v170_v23 = vsel %vm1015_vm6, 0, %v1014_v13  ;;  %v399_v57 = vor.u32 %v398_v32, %v397_v31  ;;  %v396_v62 = vor.u32 %v395_v40, %v394_v30  ;;  %v400_v6 = vshll.u32 %v1045_v61, %v385_v7 }
  0xb5   :  { %v171_v41 = vsub.s32 32, %v170_v23  ;;  %v175_v25 = vsub.s32 4294967266, %v170_v23  ;;  %v172_v47 = vshll.u32 %v163_v42, %v170_v23  ;;  %v185_v63 = vsub.s32 4, %v1235_v27 }
  0xb6   :  { %v379_v48 = vor.u32 8388608, %v378_v21  ;;  %vm63_vm7 = vcmp.lt.s32.totalorder %v1084_v16, 0  ;;  %v402_v33 = vor.u32 %v401_v50, %v400_v6  ;;  %vm406_vm8 = vcmp.lt.s32.totalorder %v1269_v36, 4 }
  0xb7   :  { %v173_v53 = vshrl.u32 %v155_v9, %v171_v41  ;;  %v176_v39 = vadd.s32 127, %v175_v25  ;;  %v315_v35 = vadd.s32 536870912, %v314_v52  ;;  %vm403_vm9 = vcmp.lt.s32.totalorder %v1269_v36, 1 }
  0xb8   :  { %vm405_vm10 = vcmp.lt.s32.totalorder %v1269_v36, 3  ;;  %v412_v8 = vsel %vm406_vm8, %v399_v57, 920167782  ;;  %v411_v4 = vsel %vm403_vm9, %v1285_v54, %v1287_v56  ;;  %v186_v11 = vsel %vm63_vm7, %v185_v63, %v1235_v27 }
  0xb9   :  { %v174_v59 = vor.u32 %v173_v53, %v172_v47  ;;  %v177_v60 = vshll.u32 %v176_v39, 23  ;;  %v413_v10 = vsel %vm405_vm10, %v396_v62, %v412_v8  ;;  %v1306_v45 = vshll.u32 %v379_v48, 8 }
  0xba   :  { %vm404_vm11 = vcmp.lt.s32.totalorder %v1269_v36, 2  ;;  %v415_v12 = vsel %vm403_vm9, %v1287_v56, %v396_v62  ;;  %v416_v13 = vsel %vm406_vm8, %v402_v33, 1326507024  ;;  %vm62_vm12 = vcmp.le.f32.partialorder %v61_v20, 0.7853982 }
  0xbb   :  { %v178_v42 = vor.u32 4788187, %v177_v60  ;;  %v181_v3 = vcvt.s32.f32 %v174_v59  ;;  %v1316_v14 = vshrl.u32 %v315_v35, 30  ;;  %v414_v27 = vsel %vm404_vm11, %v411_v4, %v413_v10 }
  0xbc   :  { %v417_v9 = vsel %vm405_vm10, %v399_v57, %v416_v13  ;;  %v188_v21 = vsel %vm62_vm12, 0, %v186_v11  ;;  %v420_v28 = vand.u32 65535, %v1306_v45  ;;  %v445_v41 = vshrl.u32 %v414_v27, 16 }
  0xbd   :  { %v179_v2 = vand.u32 2147483647, %v178_v42  ;;  %v418_v23 = vsel %vm404_vm11, %v415_v12, %v417_v9  ;;  %v205_v26 = vadd.s32 3, %v188_v21  ;;  %v317_v40 = vshll.u32 %v1316_v14, 30 }
  0xbe   :  { %v422_v38 = vand.u32 65535, %v418_v23  ;;  %v423_v20 = vshrl.u32 %v418_v23, 16  ;;  %v421_v29 = vshrl.u32 %v1306_v45, 16  ;;  %v444_v47 = vand.u32 65535, %v414_v27 }
  0xbf   :  { %v182_v7 = vmul.f32 %v181_v3, %v179_v2  ;;  %v447_v50 = vmul.u32 %v445_v41, %v420_v28  ;;  %v1330_v57 = vand.u32 3, %v205_v26  ;;  %v1332_v59 = vsub.s32 %v314_v52, %v317_v40 }
  0xc0   :  { %v425_v31 = vmul.u32 %v423_v20, %v420_v28  ;;  %v426_v32 = vmul.u32 %v422_v38, %v421_v29  ;;  %v424_v60 = vmul.u32 %v422_v38, %v420_v28  ;;  %v408_v42 = vsel %vm406_vm8, %v396_v62, 2102212464 }
  0xc1   :  { %v183_v15 = vxor.u32 2147483648, %v182_v7  ;;  %v427_v33 = vmul.u32 %v423_v20, %v421_v29  ;;  %v448_v2 = vmul.u32 %v444_v47, %v421_v29  ;;  %v450_v11 = vshll.u32 %v447_v50, 16 }
  0xc2   :  { %v428_v6 = vshll.u32 %v425_v31, 16  ;;  %v430_v35 = vshll.u32 %v426_v32, 16  ;;  %vm319_vm14 = vcmp.lt.s32.totalorder %v1332_v59, 0  ;;  %v320_v52 = vsub.s32 0, %v1332_v59 }
  0xc3   :  { %v184_v24 = vsel %vm63_vm7, %v183_v15, %v182_v7  ;;  %v446_v27 = vmul.u32 %v444_v47, %v420_v28  ;;  %v429_v9 = vshrl.u32 %v425_v31, 16  ;;  %v449_v21 = vmul.u32 %v445_v41, %v421_v29 }
  0xc4   :  { %v187_v25 = vsel %vm62_vm12, %v1084_v16, %v184_v24  ;;  %vm432_vm13 = vc.u32 %v424_v60, %v428_v6  ;;  %v434_v8 = vadd.s32 %v428_v6, %v424_v60  ;;  %v452_v23 = vshll.u32 %v448_v2, 16 }
  0xc5   :  { %v189_v30 = vmul.f32 %v187_v25, %v187_v25  ;;  %v433_v10 = vsel %vm432_vm13, 1, %v1040_v0  ;;  %vm454_vm0 = vc.u32 %v446_v27, %v450_v11  ;;  %v456_v20 = vadd.s32 %v450_v11, %v446_v27 }
  0xc6   :  { %v435_v7 = vadd.s32 %v433_v10, %v427_v33  ;;  %vm436_vm15 = vc.u32 %v434_v8, %v430_v35  ;;  %v321_v26 = vsel %vm319_vm14, %v320_v52, %v1332_v59  ;;  %v387_v40 = vshrl.u32 %v1041_v49, %v1260_v44 }
  0xc7   :  { %v190_v53 = vmul.f32 -0.001358992, %v189_v30  ;;  %v197_v39 = vmul.f32 -0.00019511016, %v189_v30  ;;  %v437_v62 = vsel %vm436_vm15, 1, %v1040_v0  ;;  %vm458_vm1 = vc.u32 %v456_v20, %v452_v23 }
  0xc8   :  { %v439_v15 = vadd.s32 %v437_v62, %v435_v7  ;;  %v407_v41 = vsel %vm403_vm9, %v387_v40, %v1285_v54  ;;  %v409_v29 = vsel %vm405_vm10, %v1287_v56, %v408_v42  ;;  %v459_v47 = vsel %vm458_vm1, 1, %v1040_v0 }
  0xc9   :  { %v191_v63 = vadd.f32 0.041655596, %v190_v53  ;;  %v198_v48 = vadd.f32 0.008332121, %v197_v39  ;;  %v455_v39 = vsel %vm454_vm0, 1, %v1040_v0  ;;  %vm207_vm2 = vcmp.lt.s32.totalorder %v1330_v57, 2 }
  0xca   :  { %v440_v53 = vadd.s32 %v439_v15, %v429_v9  ;;  %v457_v31 = vadd.s32 %v455_v39, %v449_v21  ;;  %v322_v33 = vclz %v321_v26  ;;  %v529_v54 = vand.u32 2139095040, %v1100_v34 }
  0xcb   :  { %v192_v3 = vmul.f32 %v191_v63, %v189_v30  ;;  %v199_v4 = vmul.f32 %v198_v48, %v189_v30  ;;  %v451_v63 = vshrl.u32 %v447_v50, 16  ;;  %vm208_vm3 = vcmp.eq.s32.totalorder %v1330_v57, 0 }
  0xcc   :  { %v461_v48 = vadd.s32 %v459_v47, %v457_v31  ;;  %vm211_vm4 = vcmp.eq.s32.totalorder %v1330_v57, 2  ;;  %v410_v56 = vsel %vm404_vm11, %v407_v41, %v409_v29  ;;  %v530_v10 = vshrl.u32 %v529_v54, 23 }
  0xcd   :  { %v193_v12 = vadd.f32 -0.4999988, %v192_v3  ;;  %v200_v13 = vadd.f32 -0.16666654, %v199_v4  ;;  %v453_v3 = vshrl.u32 %v448_v2, 16  ;;  %vm204_vm5 = vweird.f32 %v1084_v16 }
  0xce   :  { %v462_v4 = vadd.s32 %v461_v48, %v451_v63  ;;  %v526_v11 = vand.u32 2147483647, %v1100_v34  ;;  %v1017_v7 = vadd.s32 4294967294, %v322_v33  ;;  %v464_v36 = vmul.u32 %v1306_v45, %v410_v56 }
  0xcf   :  { %v194_v38 = vmul.f32 %v193_v12, %v189_v30  ;;  %v201_v24 = vmul.f32 %v200_v13, %v189_v30  ;;  %v431_v30 = vshrl.u32 %v426_v32, 16  ;;  %v1022_v13 = vadd.s32 4294967169, %v530_v10 }
  0xd0   :  { %v463_v42 = vadd.s32 %v462_v4, %v453_v3  ;;  %vm1018_vm7 = vcmp.lt.s32.totalorder %v1017_v7, 0  ;;  %v533_v57 = vand.u32 8388607, %v526_v11  ;;  %vm1377_vm9 = vcmp.le.f32.partialorder %v371_v37, 0.7853982 }
  0xd1   :  { %v195_v60 = vadd.f32 1.0, %v194_v38  ;;  %v202_v28 = vadd.f32 1.0, %v201_v24  ;;  %v441_v35 = vadd.s32 %v440_v53, %v431_v30  ;;  %v536_v27 = vadd.s32 1, %v1022_v13 }
  0xd2   :  { %v467_v12 = vadd.s32 1, %v463_v42  ;;  %v1372_v45 = vsel %vm1018_vm7, 0, %v1017_v7  ;;  %v534_v38 = vor.u32 8388608, %v533_v57  ;;  %v1383_v53 = vadd.s32 %v1258_v46, %v1253_v5 }
  0xd3   :  { %v203_v6 = vmul.f32 %v202_v28, %v187_v25  ;;  %v212_v44 = vxor.u32 2147483648, %v195_v60  ;;  %v460_v25 = vadd.s32 %v456_v20, %v452_v23  ;;  %vm537_vm8 = vcmp.gt.s32.totalorder %v536_v27, 0 }
  0xd4   :  { %v538_v15 = vsel %vm537_vm8, %v536_v27, 0  ;;  %v684_v20 = vand.u32 2139095040, %v1088_v18  ;;  %v330_v39 = vsub.s32 4294967266, %v1372_v45  ;;  %vm373_vm10 = vcmp.lt.s32.totalorder %v1106_v43, 0 }
  0xd5   :  { %v209_v8 = vxor.u32 2147483648, %v203_v6  ;;  %v213_v50 = vsel %vm211_vm4, %v212_v44, %v203_v6  ;;  %vm466_vm6 = vc.u32 %v441_v35, %v460_v25  ;;  %v540_v21 = vand.u32 31, %v538_v15 }
  0xd6   :  { %v468_v62 = vsel %vm466_vm6, %v467_v12, %v463_v42  ;;  %v681_v29 = vand.u32 2147483647, %v1088_v18  ;;  %v1391_v47 = vshll.u32 %v534_v38, 8  ;;  %v685_v6 = vshrl.u32 %v684_v20, 23 }
  0xd7   :  { %v210_v32 = vsel %vm208_vm3, %v195_v60, %v209_v8  ;;  %v469_v16 = vadd.s32 %v468_v62, %v464_v36  ;;  %v541_v24 = vsub.s32 32, %v540_v21  ;;  %v465_v60 = vadd.s32 %v460_v25, %v441_v35 }
  0xd8   :  { %v214_v2 = vsel %vm207_vm2, %v210_v32, %v213_v50  ;;  %v539_v46 = vshrl.u32 %v538_v15, 5  ;;  %v543_v44 = vshll.u32 %v1041_v49, %v540_v21  ;;  %v546_v63 = vshll.u32 %v1042_v51, %v540_v21 }
  0xd9   :  { %v215_v52 = vsel %vm204_vm5, nan, %v214_v2  ;;  %v470_v9 = vadd.s32 536870912, %v469_v16  ;;  %v544_v41 = vshrl.u32 %v1042_v51, %v541_v24  ;;  %v547_v37 = vshrl.u32 %v1043_v55, %v541_v24 }
  0xda   :  { %997 = vst [vmem:[%s1772_s3] sm:$0xff] %v215_v52  ;;  %v550_v30 = vshrl.u32 %v1044_v58, %v541_v24  ;;  %v549_v48 = vshll.u32 %v1043_v55, %v540_v21  ;;  %v552_v33 = vshll.u32 %v1044_v58, %v540_v21  ;;  %v553_v35 = vshrl.u32 %v1045_v61, %v541_v24 }
  0xdb   :  { %1003 = vst [vmem:[%s1772_s3 + $0x30] sm:$0xff] %v215_v52  ;;  %v471_v23 = vshrl.u32 %v470_v9, 30  ;;  %v545_v4 = vor.u32 %v544_v41, %v543_v44  ;;  %v556_v54 = vshrl.u32 %v1046_v1, %v541_v24  ;;  %v548_v25 = vor.u32 %v547_v37, %v546_v63 }
  0xdc   :  { %v551_v32 = vor.u32 %v550_v30, %v549_v48  ;;  %v554_v50 = vor.u32 %v553_v35, %v552_v33  ;;  %v555_v42 = vshll.u32 %v1045_v61, %v540_v21  ;;  %v575_v10 = vand.u32 65535, %v1391_v47 }
  0xdd   :  { %v472_v40 = vshll.u32 %v471_v23, 30  ;;  %v495_v31 = vsub.s32 4, %v471_v23  ;;  %v576_v2 = vshrl.u32 %v1391_v47, 16  ;;  %v1406_v52 = vand.u32 8388607, %v681_v29 }
  0xde   :  { %v542_v13 = vshrl.u32 %v1041_v49, %v541_v24  ;;  %v1025_v36 = vadd.s32 4294967169, %v685_v6  ;;  %v557_v62 = vor.u32 %v556_v54, %v555_v42  ;;  %vm558_vm12 = vcmp.lt.s32.totalorder %v539_v46, 1 }
  0xdf   :  { %v473_v28 = vsub.s32 %v469_v16, %v472_v40  ;;  %v496_v3 = vsel %vm373_vm10, %v495_v31, %v471_v23  ;;  %vm560_vm13 = vcmp.lt.s32.totalorder %v539_v46, 3  ;;  %vm561_vm14 = vcmp.lt.s32.totalorder %v539_v46, 4 }
  0xe0   :  { %v498_v12 = vsel %vm1377_vm9, 0, %v496_v3  ;;  %v563_v27 = vsel %vm561_vm14, %v551_v32, 2102212464  ;;  %v566_v16 = vsel %vm558_vm12, %v545_v4, %v548_v25  ;;  %v567_v57 = vsel %vm561_vm14, %v554_v50, 920167782 }
  0xe1   :  { %vm474_vm11 = vcmp.lt.s32.totalorder %v473_v28, 0  ;;  %v475_v5 = vsub.s32 0, %v473_v28  ;;  %vm559_vm0 = vcmp.lt.s32.totalorder %v539_v46, 2  ;;  %v562_v15 = vsel %vm558_vm12, %v542_v13, %v545_v4 }
  0xe2   :  { %v568_v21 = vsel %vm560_vm13, %v551_v32, %v567_v57  ;;  %v564_v20 = vsel %vm560_vm13, %v548_v25, %v563_v27  ;;  %v570_v40 = vsel %vm558_vm12, %v548_v25, %v551_v32  ;;  %v571_v41 = vsel %vm561_vm14, %v557_v62, 1326507024 }
  0xe3   :  { %v476_v8 = vsel %vm474_vm11, %v475_v5, %v473_v28  ;;  %v569_v31 = vsel %vm559_vm0, %v566_v16, %v568_v21  ;;  %v691_v37 = vadd.s32 1, %v1025_v36  ;;  %v572_v5 = vsel %vm560_vm13, %v554_v50, %v571_v41 }
  0xe4   :  { %v477_v56 = vclz %v476_v8  ;;  %v599_v44 = vand.u32 65535, %v569_v31  ;;  %v1415_v63 = vadd.s32 3, %v498_v12  ;;  %v573_v48 = vsel %vm559_vm0, %v570_v40, %v572_v5 }
  0xe5   :  { %v600_v33 = vshrl.u32 %v569_v31, 16  ;;  %v689_v35 = vor.u32 8388608, %v1406_v52  ;;  %v577_v4 = vand.u32 65535, %v573_v48  ;;  %v1420_v54 = vsel %vm559_vm0, %v562_v15, %v564_v20 }
  0xe6   :  { %v1020_v7 = vadd.s32 4294967294, %v477_v56  ;;  %vm692_vm1 = vcmp.gt.s32.totalorder %v691_v37, 0  ;;  %v601_v50 = vmul.u32 %v599_v44, %v575_v10  ;;  %vm514_vm11 = vweird.f32 %v1106_v43 }
  0xe7   :  { %v602_v56 = vmul.u32 %v600_v33, %v575_v10  ;;  %v604_v42 = vmul.u32 %v600_v33, %v576_v2  ;;  %v579_v12 = vmul.u32 %v577_v4, %v575_v10  ;;  %v581_v13 = vmul.u32 %v577_v4, %v576_v2 }
  0xe8   :  { %vm1021_vm15 = vcmp.lt.s32.totalorder %v1020_v7, 0 }
  0xe9   :  { %v480_v9 = vsel %vm1021_vm15, 0, %v1020_v7  ;;  %v605_v36 = vshll.u32 %v602_v56, 16  ;;  %v606_v57 = vshrl.u32 %v602_v56, 16  ;;  %v585_v21 = vshll.u32 %v581_v13, 16 }
  0xea   :  { %v481_v23 = vsub.s32 32, %v480_v9  ;;  %v485_v38 = vsub.s32 4294967266, %v480_v9  ;;  %v482_v24 = vshll.u32 %v473_v28, %v480_v9  ;;  %v578_v28 = vshrl.u32 %v573_v48, 16 }
  0xeb   :  { %vm609_vm2 = vc.u32 %v601_v50, %v605_v36  ;;  %v611_v40 = vadd.s32 %v605_v36, %v601_v50  ;;  %v586_v41 = vshrl.u32 %v581_v13, 16 }
  0xec   :  { %v483_v30 = vshrl.u32 %v465_v60, %v481_v23  ;;  %v486_v6 = vadd.s32 127, %v485_v38  ;;  %v603_v60 = vmul.u32 %v599_v44, %v576_v2  ;;  %v580_v32 = vmul.u32 %v578_v28, %v575_v10 }
  0xed   :  { %v582_v27 = vmul.u32 %v578_v28, %v576_v2  ;;  %v610_v38 = vsel %vm609_vm2, 1, %v1040_v0  ;;  %v693_v10 = vsel %vm692_vm1, %v691_v37, 0 }
  0xee   :  { %v484_v8 = vor.u32 %v483_v30, %v482_v24  ;;  %v487_v3 = vshll.u32 %v486_v6, 23  ;;  %v583_v16 = vshll.u32 %v580_v32, 16  ;;  %v584_v9 = vshrl.u32 %v580_v32, 16 }
  0xef   :  { %v607_v46 = vshll.u32 %v603_v60, 16  ;;  %v612_v24 = vadd.s32 %v610_v38, %v604_v42  ;;  %v608_v6 = vshrl.u32 %v603_v60, 16  ;;  %v695_v5 = vand.u32 31, %v693_v10 }
  0xf0   :  { %v488_v25 = vor.u32 4788187, %v487_v3  ;;  %v491_v7 = vcvt.s32.f32 %v484_v8  ;;  %vm587_vm3 = vc.u32 %v579_v12, %v583_v16  ;;  %v589_v23 = vadd.s32 %v583_v16, %v579_v12 }
  0xf1   :  { %v588_v20 = vsel %vm587_vm3, 1, %v1040_v0  ;;  %vm613_vm5 = vc.u32 %v611_v40, %v607_v46  ;;  %v1429_v8 = vshrl.u32 %v693_v10, 5  ;;  %v1434_v3 = vadd.s32 %v611_v40, %v607_v46 }
  0xf2   :  { %v489_v62 = vand.u32 2147483647, %v488_v25  ;;  %v590_v2 = vadd.s32 %v588_v20, %v582_v27  ;;  %vm591_vm4 = vc.u32 %v589_v23, %v585_v21  ;;  %v614_v33 = vsel %vm613_vm5, 1, %v1040_v0 }
  0xf3   :  { %v592_v30 = vsel %vm591_vm4, 1, %v1040_v0  ;;  %v616_v4 = vadd.s32 %v614_v33, %v612_v24  ;;  %v1436_v28 = vsub.s32 32, %v695_v5  ;;  %v698_v25 = vshll.u32 %v1041_v49, %v695_v5 }
  0xf4   :  { %v492_v15 = vmul.f32 %v491_v7, %v489_v62  ;;  %v594_v48 = vadd.s32 %v592_v30, %v590_v2  ;;  %v701_v32 = vshll.u32 %v1042_v51, %v695_v5  ;;  %v704_v26 = vshll.u32 %v1043_v55, %v695_v5 }
  0xf5   :  { %v617_v50 = vadd.s32 %v616_v4, %v606_v57  ;;  %v699_v42 = vshrl.u32 %v1042_v51, %v1436_v28  ;;  %v702_v7 = vshrl.u32 %v1043_v55, %v1436_v28  ;;  %v705_v62 = vshrl.u32 %v1044_v58, %v1436_v28 }
  0xf6   :  { %v493_v31 = vxor.u32 2147483648, %v492_v15  ;;  %v595_v60 = vadd.s32 %v594_v48, %v584_v9  ;;  %v619_v16 = vmul.u32 %v1391_v47, %v1420_v54  ;;  %v707_v57 = vshll.u32 %v1044_v58, %v695_v5 }
  0xf7   :  { %v618_v27 = vadd.s32 %v617_v50, %v608_v6  ;;  %vm713_vm6 = vcmp.lt.s32.totalorder %v1429_v8, 1  ;;  %v1455_v46 = vor.u32 %v699_v42, %v698_v25  ;;  %v1457_v23 = vor.u32 %v702_v7, %v701_v32 }
  0xf8   :  { %v494_v44 = vsel %vm373_vm10, %v493_v31, %v492_v15  ;;  %v1445_v36 = vadd.s32 %v595_v60, %v586_v41  ;;  %v708_v38 = vshrl.u32 %v1045_v61, %v1436_v28  ;;  %v710_v20 = vshll.u32 %v1045_v61, %v695_v5 }
  0xf9   :  { %v497_v37 = vsel %vm1377_vm9, %v1106_v43, %v494_v44  ;;  %v622_v15 = vadd.s32 1, %v618_v27  ;;  %v1462_v40 = vor.u32 %v705_v62, %v704_v26  ;;  %v711_v24 = vshrl.u32 %v1046_v1, %v1436_v28 }
  0xfa   :  { %v499_v56 = vmul.f32 %v497_v37, %v497_v37  ;;  %vm621_vm7 = vc.u32 %v1445_v36, %v1434_v3  ;;  %v709_v31 = vor.u32 %v708_v38, %v707_v57  ;;  %vm715_vm8 = vcmp.lt.s32.totalorder %v1429_v8, 3 }
  0xfb   :  { %v623_v10 = vsel %vm621_vm7, %v622_v15, %v618_v27  ;;  %vm716_vm9 = vcmp.lt.s32.totalorder %v1429_v8, 4  ;;  %v712_v6 = vor.u32 %v711_v24, %v710_v20  ;;  %v326_v44 = vsub.s32 32, %v1372_v45 }
  0xfc   :  { %v500_v12 = vmul.f32 -0.001358992, %v499_v56  ;;  %v507_v13 = vmul.f32 -0.00019511016, %v499_v56  ;;  %v624_v30 = vadd.s32 %v623_v10, %v619_v16  ;;  %v331_v5 = vadd.s32 127, %v330_v39 }
  0xfd   :  { %vm714_vm10 = vcmp.lt.s32.totalorder %v1429_v8, 2  ;;  %v722_v48 = vsel %vm716_vm9, %v709_v31, 920167782  ;;  %v721_v25 = vsel %vm713_vm6, %v1455_v46, %v1457_v23  ;;  %v516_v32 = vand.u32 3, %v1415_v63 }
  0xfe   :  { %v501_v9 = vadd.f32 0.041655596, %v500_v12  ;;  %v508_v21 = vadd.f32 0.008332121, %v507_v13  ;;  %v625_v60 = vadd.s32 536870912, %v624_v30  ;;  %v723_v50 = vsel %vm715_vm8, %v1462_v40, %v722_v48 }
  0xff   :  { %v726_v39 = vsel %vm716_vm9, %v712_v6, 1326507024  ;;  %v1486_v42 = vshll.u32 %v689_v35, 8  ;;  %v725_v63 = vsel %vm713_vm6, %v1457_v23, %v1462_v40  ;;  %v328_v12 = vshrl.u32 %v1383_v53, %v326_v44 }
 0x100   :  { %v502_v47 = vmul.f32 %v501_v9, %v499_v56  ;;  %v509_v54 = vmul.f32 %v508_v21, %v499_v56  ;;  %v1488_v26 = vshrl.u32 %v625_v60, 30  ;;  %v724_v13 = vsel %vm714_vm10, %v721_v25, %v723_v50 }
 0x101   :  { %v727_v52 = vsel %vm715_vm8, %v709_v31, %v726_v39  ;;  %v332_v35 = vshll.u32 %v331_v5, 23  ;;  %vm517_vm12 = vcmp.lt.s32.totalorder %v516_v32, 2  ;;  %vm518_vm13 = vcmp.eq.s32.totalorder %v516_v32, 0 }
 0x102   :  { %v503_v41 = vadd.f32 -0.4999988, %v502_v47  ;;  %v510_v2 = vadd.f32 -0.16666654, %v509_v54  ;;  %v627_v16 = vshll.u32 %v1488_v26, 30  ;;  %vm521_vm14 = vcmp.eq.s32.totalorder %v516_v32, 2 }
 0x103   :  { %v728_v57 = vsel %vm714_vm10, %v725_v63, %v727_v52  ;;  %v730_v21 = vand.u32 65535, %v1486_v42  ;;  %v755_v15 = vshrl.u32 %v724_v13, 16  ;;  %v731_v38 = vshrl.u32 %v1486_v42, 16 }
 0x104   :  { %v504_v33 = vmul.f32 %v503_v41, %v499_v56  ;;  %v511_v4 = vmul.f32 %v510_v2, %v499_v56  ;;  %v1503_v9 = vsub.s32 %v624_v30, %v627_v16  ;;  %v732_v20 = vand.u32 65535, %v728_v57 }
 0x105   :  { %v733_v47 = vshrl.u32 %v728_v57, 16  ;;  %v327_v31 = vshll.u32 %v1332_v59, %v1372_v45  ;;  %v333_v6 = vor.u32 4788187, %v332_v35  ;;  %v757_v48 = vmul.u32 %v755_v15, %v730_v21 }
 0x106   :  { %v505_v56 = vadd.f32 1.0, %v504_v33  ;;  %v512_v7 = vadd.f32 1.0, %v511_v4  ;;  %vm629_vm15 = vcmp.lt.s32.totalorder %v1503_v9, 0  ;;  %v630_v10 = vsub.s32 0, %v1503_v9 }
 0x107   :  { %v735_v2 = vmul.u32 %v733_v47, %v730_v21  ;;  %v736_v30 = vmul.u32 %v732_v20, %v731_v38  ;;  %v734_v4 = vmul.u32 %v732_v20, %v730_v21  ;;  %v329_v59 = vor.u32 %v328_v12, %v327_v31 }
 0x108   :  { %v513_v62 = vmul.f32 %v512_v7, %v497_v37  ;;  %v522_v27 = vxor.u32 2147483648, %v505_v56  ;;  %v754_v37 = vand.u32 65535, %v724_v13  ;;  %v631_v5 = vsel %vm629_vm15, %v630_v10, %v1503_v9 }
 0x109   :  { %v632_v33 = vclz %v631_v5  ;;  %v738_v60 = vshll.u32 %v735_v2, 16  ;;  %v737_v45 = vmul.u32 %v733_v47, %v731_v38  ;;  %v740_v43 = vshll.u32 %v736_v30, 16 }
 0x10a   :  { %v519_v53 = vxor.u32 2147483648, %v513_v62  ;;  %v523_v24 = vsel %vm521_vm14, %v522_v27, %v513_v62  ;;  %v758_v25 = vmul.u32 %v754_v37, %v731_v38  ;;  %v334_v39 = vand.u32 2147483647, %v333_v6 }
 0x10b   :  { %v1023_v32 = vadd.s32 4294967294, %v632_v33  ;;  %vm742_vm0 = vc.u32 %v734_v4, %v738_v60  ;;  %v744_v50 = vadd.s32 %v738_v60, %v734_v4  ;;  %v756_v7 = vmul.u32 %v754_v37, %v730_v21 }
 0x10c   :  { %v520_v54 = vsel %vm518_vm13, %v505_v56, %v519_v53  ;;  %v743_v56 = vsel %vm742_vm0, 1, %v1040_v0  ;;  %v760_v63 = vshll.u32 %v757_v48, 16  ;;  %v762_v52 = vshll.u32 %v758_v25, 16 }
 0x10d   :  { %v524_v41 = vsel %vm517_vm12, %v520_v54, %v523_v24  ;;  %vm1024_vm1 = vcmp.lt.s32.totalorder %v1023_v32, 0  ;;  %v745_v13 = vadd.s32 %v743_v56, %v737_v45  ;;  %vm746_vm2 = vc.u32 %v744_v50, %v740_v43 }
 0x10e   :  { %v525_v44 = vsel %vm514_vm11, nan, %v524_v41  ;;  %v635_v35 = vsel %vm1024_vm1, 0, %v1023_v32  ;;  %v747_v12 = vsel %vm746_vm2, 1, %v1040_v0  ;;  %vm764_vm3 = vc.u32 %v756_v7, %v760_v63 }
 0x10f   :  { %999 = vst [vmem:[%s1772_s3 + $0x10] sm:$0xff] %v525_v44  ;;  %v766_v62 = vadd.s32 %v760_v63, %v756_v7  ;;  %v640_v27 = vsub.s32 4294967266, %v635_v35  ;;  %v739_v16 = vshrl.u32 %v735_v2, 16  ;;  %v749_v57 = vadd.s32 %v747_v12, %v745_v13 }
 0x110   :  { %1005 = vst [vmem:[%s1772_s3 + $0x40] sm:$0xff] %v525_v44  ;;  %v759_v53 = vmul.u32 %v755_v15, %v731_v38  ;;  %v697_v20 = vshrl.u32 %v1041_v49, %v1436_v28  ;;  %v718_v21 = vsel %vm716_vm9, %v1462_v40, 2102212464  ;;  %v765_v47 = vsel %vm764_vm3, 1, %v1040_v0 }
 0x111   :  { %vm768_vm4 = vc.u32 %v766_v62, %v762_v52  ;;  %v636_v37 = vsub.s32 32, %v635_v35  ;;  %v641_v54 = vadd.s32 127, %v640_v27  ;;  %v750_v24 = vadd.s32 %v749_v57, %v739_v16 }
 0x112   :  { %v767_v10 = vadd.s32 %v765_v47, %v759_v53  ;;  %v336_v31 = vcvt.s32.f32 %v329_v59  ;;  %v741_v41 = vshrl.u32 %v736_v30, 16  ;;  %v769_v2 = vsel %vm768_vm4, 1, %v1040_v0 }
 0x113   :  { %v620_v15 = vadd.s32 %v1434_v3, %v1445_v36  ;;  %v642_v38 = vshll.u32 %v641_v54, 23  ;;  %v761_v28 = vshrl.u32 %v757_v48, 16  ;;  %v717_v40 = vsel %vm713_vm6, %v697_v20, %v1455_v46 }
 0x114   :  { %v771_v6 = vadd.s32 %v769_v2, %v767_v10  ;;  %v719_v44 = vsel %vm715_vm8, %v1457_v23, %v718_v21  ;;  %v1538_v5 = vadd.s32 %v750_v24, %v741_v41  ;;  %v839_v30 = vand.u32 2139095040, %v1090_v19 }
 0x115   :  { %v337_v33 = vmul.f32 %v336_v31, %v334_v39  ;;  %v638_v4 = vshrl.u32 %v620_v15, %v636_v37  ;;  %v763_v60 = vshrl.u32 %v758_v25, 16  ;;  %v1541_v3 = vadd.s32 %v766_v62, %v762_v52 }
 0x116   :  { %v772_v59 = vadd.s32 %v771_v6, %v761_v28  ;;  %v840_v36 = vshrl.u32 %v839_v30, 23  ;;  %v637_v48 = vshll.u32 %v1503_v9, %v635_v35  ;;  %v643_v45 = vor.u32 4788187, %v642_v38 }
 0x117   :  { %v720_v46 = vsel %vm714_vm10, %v717_v40, %v719_v44  ;;  %vm776_vm5 = vc.u32 %v1538_v5, %v1541_v3  ;;  %v338_v43 = vxor.u32 2147483648, %v337_v33  ;;  %vm218_vm6 = vcmp.lt.s32.totalorder %v1086_v17, 0 }
 0x118   :  { %v773_v32 = vadd.s32 %v772_v59, %v763_v60  ;;  %v1028_v23 = vadd.s32 4294967169, %v840_v36  ;;  %v639_v50 = vor.u32 %v638_v4, %v637_v48  ;;  %v774_v25 = vmul.u32 %v1486_v42, %v720_v46 }
 0x119   :  { %v644_v7 = vand.u32 2147483647, %v643_v45  ;;  %v339_v8 = vsel %vm218_vm6, %v338_v43, %v337_v33  ;;  %vm1554_vm8 = vcmp.le.f32.partialorder %v216_v22, 0.7853982  ;;  %v836_v27 = vand.u32 2147483647, %v1090_v19 }
 0x11a   :  { %v777_v39 = vadd.s32 1, %v773_v32  ;;  %v846_v56 = vadd.s32 1, %v1028_v23  ;;  %v646_v13 = vcvt.s32.f32 %v639_v50  ;;  %v1562_v16 = vsel %vm1554_vm8, %v1086_v17, %v339_v8 }
 0x11b   :  { %v1571_v22 = vmul.f32 %v1562_v16, %v1562_v16  ;;  %v843_v47 = vand.u32 8388607, %v836_v27  ;;  %v340_v30 = vsub.s32 4, %v1316_v14  ;;  %vm528_vm10 = vcmp.lt.s32.totalorder %v1100_v34, 0 }
 0x11c   :  { %v778_v63 = vsel %vm776_vm5, %v777_v39, %v773_v32  ;;  %vm847_vm7 = vcmp.gt.s32.totalorder %v846_v56, 0  ;;  %v647_v42 = vmul.f32 %v646_v13, %v644_v7  ;;  %vm1606_vm12 = vcmp.le.f32.partialorder %v526_v11, 0.7853982 }
 0x11d   :  { %v779_v9 = vadd.s32 %v778_v63, %v774_v25  ;;  %v848_v52 = vsel %vm847_vm7, %v846_v56, 0  ;;  %v352_v40 = vmul.f32 -0.00019511016, %v1571_v22  ;;  %v844_v44 = vor.u32 8388608, %v843_v47 }
 0x11e   :  { %v850_v12 = vand.u32 31, %v848_v52  ;;  %v648_v21 = vxor.u32 2147483648, %v647_v42  ;;  %v1575_v54 = vshrl.u32 %v848_v52, 5  ;;  %v1615_v23 = vsel %vm218_vm6, %v340_v30, %v1316_v14 }
 0x11f   :  { %v780_v35 = vadd.s32 536870912, %v779_v9  ;;  %v353_v45 = vadd.f32 0.008332121, %v352_v40  ;;  %v1610_v32 = vshll.u32 %v844_v44, 8  ;;  %v345_v43 = vmul.f32 -0.001358992, %v1571_v22 }
 0x120   :  { %v1566_v53 = vsub.s32 32, %v850_v12  ;;  %v853_v24 = vshll.u32 %v1041_v49, %v850_v12  ;;  %v856_v10 = vshll.u32 %v1042_v51, %v850_v12  ;;  %v859_v2 = vshll.u32 %v1043_v55, %v850_v12 }
 0x121   :  { %v1564_v57 = vshrl.u32 %v780_v35, 30  ;;  %v862_v15 = vshll.u32 %v1044_v58, %v850_v12  ;;  %v649_v4 = vsel %vm528_vm10, %v648_v21, %v647_v42  ;;  %vm868_vm11 = vcmp.lt.s32.totalorder %v1575_v54, 1 }
 0x122   :  { %v854_v31 = vshrl.u32 %v1042_v51, %v1566_v53  ;;  %v857_v41 = vshrl.u32 %v1043_v55, %v1566_v53  ;;  %v860_v28 = vshrl.u32 %v1044_v58, %v1566_v53  ;;  %v863_v6 = vshrl.u32 %v1045_v61, %v1566_v53 }
 0x123   :  { %v782_v20 = vshll.u32 %v1564_v57, 30  ;;  %v865_v51 = vshll.u32 %v1045_v61, %v850_v12  ;;  %v866_v33 = vshrl.u32 %v1046_v1, %v1566_v53  ;;  %v1621_v50 = vsel %vm1606_vm12, %v1100_v34, %v649_v4 }
 0x124   :  { %v1597_v60 = vor.u32 %v854_v31, %v853_v24  ;;  %v1599_v59 = vor.u32 %v857_v41, %v856_v10  ;;  %v1601_v36 = vor.u32 %v860_v28, %v859_v2  ;;  %v864_v48 = vor.u32 %v863_v6, %v862_v15 }
 0x125   :  { %v783_v37 = vsub.s32 %v779_v9, %v782_v20  ;;  %v867_v61 = vor.u32 %v866_v33, %v865_v51  ;;  %vm871_vm13 = vcmp.lt.s32.totalorder %v1575_v54, 4  ;;  %vm869_vm15 = vcmp.lt.s32.totalorder %v1575_v54, 2 }
 0x126   :  { %vm870_vm0 = vcmp.lt.s32.totalorder %v1575_v54, 3  ;;  %v876_v14 = vsel %vm868_vm11, %v1597_v60, %v1599_v59  ;;  %v877_v39 = vsel %vm871_vm13, %v864_v48, 920167782  ;;  %v880_v25 = vsel %vm868_vm11, %v1599_v59, %v1601_v36 }
 0x127   :  { %vm784_vm9 = vcmp.lt.s32.totalorder %v783_v37, 0  ;;  %v785_v38 = vsub.s32 0, %v783_v37  ;;  %v881_v56 = vsel %vm871_vm13, %v867_v61, 1326507024  ;;  %v354_v7 = vmul.f32 %v353_v45, %v1571_v22 }
 0x128   :  { %v775_v63 = vadd.s32 %v1541_v3, %v1538_v5  ;;  %v885_v8 = vand.u32 65535, %v1610_v32  ;;  %v1644_v13 = vmul.f32 %v1621_v50, %v1621_v50  ;;  %v878_v35 = vsel %vm870_vm0, %v1601_v36, %v877_v39 }
 0x129   :  { %v786_v55 = vsel %vm784_vm9, %v785_v38, %v783_v37  ;;  %v882_v12 = vsel %vm870_vm0, %v864_v48, %v881_v56  ;;  %v879_v5 = vsel %vm869_vm15, %v876_v14, %v878_v35  ;;  %v886_v47 = vshrl.u32 %v1610_v32, 16 }
 0x12a   :  { %v787_v58 = vclz %v786_v55  ;;  %v883_v3 = vsel %vm869_vm15, %v880_v25, %v882_v12  ;;  %v346_v31 = vadd.f32 0.041655596, %v345_v43  ;;  %v909_v2 = vand.u32 65535, %v879_v5 }
 0x12b   :  { %v887_v24 = vand.u32 65535, %v883_v3  ;;  %v888_v10 = vshrl.u32 %v883_v3, 16  ;;  %v910_v15 = vshrl.u32 %v879_v5, 16  ;;  %v355_v38 = vadd.f32 -0.16666654, %v354_v7 }
 0x12c   :  { %v1026_v1 = vadd.s32 4294967294, %v787_v58  ;;  %v650_v40 = vsub.s32 4, %v1488_v26  ;;  %v655_v44 = vmul.f32 -0.001358992, %v1644_v13  ;;  %v662_v51 = vmul.f32 -0.00019511016, %v1644_v13 }
 0x12d   :  { %v890_v6 = vmul.u32 %v888_v10, %v885_v8  ;;  %vm683_vm1 = vcmp.lt.s32.totalorder %v1088_v18, 0  ;;  %v912_v30 = vmul.u32 %v910_v15, %v885_v8  ;;  %vm1662_vm2 = vcmp.le.f32.partialorder %v681_v29, 0.7853982 }
 0x12e   :  { %vm1027_vm14 = vcmp.lt.s32.totalorder %v1026_v1, 0  ;;  %v889_v58 = vmul.u32 %v887_v24, %v885_v8  ;;  %v892_v61 = vmul.u32 %v888_v10, %v886_v47  ;;  %v911_v45 = vmul.u32 %v909_v2, %v885_v8 }
 0x12f   :  { %v790_v11 = vsel %vm1027_vm14, 0, %v1026_v1  ;;  %v893_v48 = vshll.u32 %v890_v6, 16  ;;  %v913_v1 = vmul.u32 %v909_v2, %v886_v47  ;;  %v915_v43 = vshll.u32 %v912_v30, 16 }
 0x130   :  { %v791_v9 = vsub.s32 32, %v790_v11  ;;  %v795_v52 = vsub.s32 4294967266, %v790_v11  ;;  %v792_v42 = vshll.u32 %v783_v37, %v790_v11  ;;  %v891_v37 = vmul.u32 %v887_v24, %v886_v47 }
 0x131   :  { %vm897_vm3 = vc.u32 %v889_v58, %v893_v48  ;;  %v899_v39 = vadd.s32 %v893_v48, %v889_v58  ;;  %v663_v25 = vadd.f32 0.008332121, %v662_v51  ;;  %v914_v7 = vmul.u32 %v910_v15, %v886_v47 }
 0x132   :  { %v793_v20 = vshrl.u32 %v775_v63, %v791_v9  ;;  %v796_v21 = vadd.s32 127, %v795_v52  ;;  %v895_v11 = vshll.u32 %v891_v37, 16  ;;  %v898_v56 = vsel %vm897_vm3, 1, %v1040_v0 }
 0x133   :  { %vm919_vm4 = vc.u32 %v911_v45, %v915_v43  ;;  %v900_v63 = vadd.s32 %v898_v56, %v892_v61  ;;  %v917_v35 = vshll.u32 %v913_v1, 16  ;;  %v921_v8 = vadd.s32 %v915_v43, %v911_v45 }
 0x134   :  { %v794_v41 = vor.u32 %v793_v20, %v792_v42  ;;  %v797_v28 = vshll.u32 %v796_v21, 23  ;;  %vm901_vm5 = vc.u32 %v899_v39, %v895_v11  ;;  %v920_v9 = vsel %vm919_vm4, 1, %v1040_v0 }
 0x135   :  { %v902_v52 = vsel %vm901_vm5, 1, %v1040_v0  ;;  %v922_v12 = vadd.s32 %v920_v9, %v914_v7  ;;  %v852_v20 = vshrl.u32 %v1041_v49, %v1566_v53  ;;  %v894_v5 = vshrl.u32 %v890_v6, 16 }
 0x136   :  { %v798_v33 = vor.u32 4788187, %v797_v28  ;;  %v801_v4 = vcvt.s32.f32 %v794_v41  ;;  %v904_v3 = vadd.s32 %v902_v52, %v900_v63  ;;  %v664_v21 = vmul.f32 %v663_v25, %v1644_v13 }
 0x137   :  { %v805_v47 = vsub.s32 4, %v1564_v57  ;;  %v873_v24 = vsel %vm871_vm13, %v1601_v36, 2102212464  ;;  %vm923_vm6 = vc.u32 %v921_v8, %v917_v35  ;;  %v896_v41 = vshrl.u32 %v891_v37, 16 }
 0x138   :  { %v799_v14 = vand.u32 2147483647, %v798_v33  ;;  %v905_v2 = vadd.s32 %v904_v3, %v894_v5  ;;  %v924_v15 = vsel %vm923_vm6, 1, %v1040_v0  ;;  %v656_v28 = vadd.f32 0.041655596, %v655_v44 }
 0x139   :  { %v916_v53 = vshrl.u32 %v912_v30, 16  ;;  %v926_v6 = vadd.s32 %v924_v15, %v922_v12  ;;  %v872_v36 = vsel %vm868_vm11, %v852_v20, %v1597_v60  ;;  %v874_v33 = vsel %vm870_vm0, %v1599_v59, %v873_v24 }
 0x13a   :  { %v802_v29 = vmul.f32 %v801_v4, %v799_v14  ;;  %v1688_v37 = vadd.s32 %v905_v2, %v896_v41  ;;  %v347_v0 = vmul.f32 %v346_v31, %v1571_v22  ;;  %v665_v44 = vadd.f32 -0.16666654, %v664_v21 }
 0x13b   :  { %v918_v4 = vshrl.u32 %v913_v1, 16  ;;  %v927_v58 = vadd.s32 %v926_v6, %v916_v53  ;;  %v356_v48 = vmul.f32 %v355_v38, %v1571_v22  ;;  %v1692_v45 = vadd.s32 %v921_v8, %v917_v35 }
 0x13c   :  { %v803_v42 = vxor.u32 2147483648, %v802_v29  ;;  %v651_v60 = vsel %vm528_vm10, %v650_v40, %v1488_v26  ;;  %v806_v59 = vsel %vm683_vm1, %v805_v47, %v1564_v57  ;;  %v875_v31 = vsel %vm869_vm15, %v872_v36, %v874_v33 }
 0x13d   :  { %v928_v43 = vadd.s32 %v927_v58, %v918_v4  ;;  %v657_v1 = vmul.f32 %v656_v28, %v1644_v13  ;;  %vm931_vm7 = vc.u32 %v1688_v37, %v1692_v45  ;;  %v343_v11 = vsel %vm1554_vm8, 0, %v1615_v23 }
 0x13e   :  { %v804_v10 = vsel %vm683_vm1, %v803_v42, %v802_v29  ;;  %v666_v26 = vmul.f32 %v665_v44, %v1644_v13  ;;  %v808_v57 = vsel %vm1662_vm2, 0, %v806_v59  ;;  %v929_v25 = vmul.u32 %v1610_v32, %v875_v31 }
 0x13f   :  { %v807_v49 = vsel %vm1662_vm2, %v1088_v18, %v804_v10  ;;  %v932_v40 = vadd.s32 1, %v928_v43  ;;  %v348_v56 = vadd.f32 -0.4999988, %v347_v0  ;;  %v357_v7 = vadd.f32 1.0, %v356_v48 }
 0x140   :  { %v809_v51 = vmul.f32 %v807_v49, %v807_v49  ;;  %v653_v29 = vsel %vm1606_vm12, 0, %v651_v60  ;;  %v658_v9 = vadd.f32 -0.4999988, %v657_v1  ;;  %v667_v35 = vadd.f32 1.0, %v666_v26 }
 0x141   :  { %v933_v63 = vsel %vm931_vm7, %v932_v40, %v928_v43  ;;  %v825_v8 = vadd.s32 3, %v808_v57  ;;  %v349_v20 = vmul.f32 %v348_v56, %v1571_v22  ;;  %v358_v5 = vmul.f32 %v357_v7, %v1562_v16 }
 0x142   :  { %v810_v30 = vmul.f32 -0.001358992, %v809_v51  ;;  %v817_v61 = vmul.f32 -0.00019511016, %v809_v51  ;;  %v934_v23 = vadd.s32 %v933_v63, %v929_v25  ;;  %v360_v32 = vadd.s32 3, %v343_v11 }
 0x143   :  { %v670_v3 = vadd.s32 3, %v653_v29  ;;  %v659_v21 = vmul.f32 %v658_v9, %v1644_v13  ;;  %v668_v10 = vmul.f32 %v667_v35, %v1621_v50  ;;  %v826_v41 = vand.u32 3, %v825_v8 }
 0x144   :  { %v811_v14 = vadd.f32 0.041655596, %v810_v30  ;;  %v818_v38 = vadd.f32 0.008332121, %v817_v61  ;;  %v935_v55 = vadd.s32 536870912, %v934_v23  ;;  %v56_v53 = vlaneseq }
 0x145   :  { %v350_v6 = vadd.f32 1.0, %v349_v20  ;;  %v361_v22 = vand.u32 3, %v360_v32  ;;  %v660_v16 = vadd.f32 1.0, %v659_v21  ;;  %v671_v36 = vand.u32 3, %v670_v3 }
 0x146   :  { %v812_v54 = vmul.f32 %v811_v14, %v809_v51  ;;  %v819_v39 = vmul.f32 %v818_v38, %v809_v51  ;;  %v1717_v24 = vshrl.u32 %v935_v55, 30  ;;  %v674_v13 = vxor.u32 2147483648, %v668_v10 }
 0x147   :  { %vm827_vm8 = vcmp.lt.s32.totalorder %v826_v41, 2  ;;  %vm828_vm9 = vcmp.eq.s32.totalorder %v826_v41, 0  ;;  %vm831_vm10 = vcmp.eq.s32.totalorder %v826_v41, 2  ;;  %vm824_vm12 = vweird.f32 %v1088_v18 }
 0x148   :  { %v813_v52 = vadd.f32 -0.4999988, %v812_v54  ;;  %v820_v62 = vadd.f32 -0.16666654, %v819_v39  ;;  %v937_v28 = vshll.u32 %v1717_v24, 30  ;;  %v367_v48 = vxor.u32 2147483648, %v350_v6 }
 0x149   :  { %v677_v30 = vxor.u32 2147483648, %v660_v16  ;;  %vm363_vm13 = vcmp.eq.s32.totalorder %v361_v22, 0  ;;  %vm673_vm14 = vcmp.eq.s32.totalorder %v671_v36, 0  ;;  %vm366_vm15 = vcmp.eq.s32.totalorder %v361_v22, 2 }
 0x14a   :  { %v814_v12 = vmul.f32 %v813_v52, %v809_v51  ;;  %v821_v42 = vmul.f32 %v820_v62, %v809_v51  ;;  %v364_v51 = vxor.u32 2147483648, %v358_v5  ;;  %v938_v0 = vsub.s32 %v934_v23, %v937_v28 }
 0x14b   :  { %v675_v43 = vsel %vm673_vm14, %v660_v16, %v674_v13  ;;  %vm676_vm0 = vcmp.eq.s32.totalorder %v671_v36, 2  ;;  %vm362_vm1 = vcmp.lt.s32.totalorder %v361_v22, 2  ;;  %v368_v14 = vsel %vm366_vm15, %v367_v48, %v358_v5 }
 0x14c   :  { %v815_v46 = vadd.f32 1.0, %v814_v12  ;;  %v822_v47 = vadd.f32 1.0, %v821_v42  ;;  %vm939_vm11 = vcmp.lt.s32.totalorder %v938_v0, 0  ;;  %v940_v50 = vsub.s32 0, %v938_v0 }
 0x14d   :  { %v365_v31 = vsel %vm363_vm13, %v350_v6, %v364_v51  ;;  %vm672_vm2 = vcmp.lt.s32.totalorder %v671_v36, 2  ;;  %v678_v38 = vsel %vm676_vm0, %v677_v30, %v668_v10  ;;  %vm359_vm4 = vweird.f32 %v1086_v17 }
 0x14e   :  { %v823_v2 = vmul.f32 %v822_v47, %v807_v49  ;;  %v832_v15 = vxor.u32 2147483648, %v815_v46  ;;  %v57_v49 = vand.u32 127, %v56_v53  ;;  %v941_v60 = vsel %vm939_vm11, %v940_v50, %v938_v0 }
 0x14f   :  { %v942_v59 = vclz %v941_v60  ;;  %v369_v11 = vsel %vm362_vm1, %v365_v31, %v368_v14  ;;  %v679_v26 = vsel %vm672_vm2, %v675_v43, %v678_v38  ;;  %vm669_vm5 = vweird.f32 %v1100_v34 }
 0x150   :  { %v829_v33 = vxor.u32 2147483648, %v823_v2  ;;  %v833_v4 = vsel %vm831_vm10, %v832_v15, %v823_v2  ;;  %v1728_v1 = vadd.s32 128, %v57_v49  ;;  %v930_v57 = vadd.s32 %v1692_v45, %v1688_v37 }
 0x151   :  { %v1029_v18 = vadd.s32 4294967294, %v942_v59  ;;  %v370_v25 = vsel %vm359_vm4, nan, %v369_v11  ;;  %v680_v56 = vsel %vm669_vm5, nan, %v679_v26  ;;  %vm838_vm7 = vcmp.lt.s32.totalorder %v1090_v19, 0 }
 0x152   :  { %v830_v44 = vsel %vm828_vm9, %v815_v46, %v829_v33  ;;  %vm60_vm6 = vcmp.lt.s32.totalorder %v1728_v1, 255  ;;  %v960_v12 = vsub.s32 4, %v1717_v24 }
 0x153   :  { %v834_v58 = vsel %vm827_vm8, %v830_v44, %v833_v4  ;;  %vm1030_vm3 = vcmp.lt.s32.totalorder %v1029_v18, 0  ;;  %v992_v62 = vsel %vm60_vm6, %v370_v25, %v1086_v17  ;;  %v994_v23 = vsel %vm60_vm6, %v680_v56, %v1100_v34 }
 0x154   :  { %v835_v61 = vsel %vm824_vm12, nan, %v834_v58  ;;  %v945_v40 = vsel %vm1030_vm3, 0, %v1029_v18  ;;  %998 = vst [vmem:[%s1772_s3 + $0x8] sm:$0xff] %v992_v62  ;;  %vm837_vm8 = vcmp.le.f32.partialorder %v836_v27, 0.7853982  ;;  %v961_v32 = vsel %vm838_vm7, %v960_v12, %v1717_v24 }
 0x155   :  { %1001 = vst [vmem:[%s1772_s3 + $0x20] sm:$0xf] %v835_v61  ;;  %v946_v54 = vsub.s32 32, %v945_v40  ;;  %v950_v39 = vsub.s32 4294967266, %v945_v40  ;;  %v947_v7 = vshll.u32 %v938_v0, %v945_v40  ;;  %v963_v46 = vsel %vm837_vm8, 0, %v961_v32 }
 0x156   :  { %1007 = vst [vmem:[%s1772_s3 + $0x50] sm:$0xf] %v835_v61  ;;  %v980_v15 = vadd.s32 3, %v963_v46  ;;  %vm979_vm12 = vweird.f32 %v1090_v19 }
 0x157   :  { %v948_v29 = vshrl.u32 %v930_v57, %v946_v54  ;;  %v951_v63 = vadd.s32 127, %v950_v39  ;;  %1000 = vst [vmem:[%s1772_s3 + $0x18] sm:$0xff] %v994_v23 }
 0x158   :  { %1004 = vst [vmem:[%s1772_s3 + $0x38] sm:$0xff] %v992_v62  ;;  %v981_v22 = vand.u32 3, %v980_v15 }
 0x159   :  { %v949_v9 = vor.u32 %v948_v29, %v947_v7  ;;  %v952_v52 = vshll.u32 %v951_v63, 23  ;;  %1006 = vst [vmem:[%s1772_s3 + $0x48] sm:$0xff] %v994_v23 }
 0x15a   :  { %vm983_vm9 = vcmp.eq.s32.totalorder %v981_v22, 0  ;;  %vm986_vm10 = vcmp.eq.s32.totalorder %v981_v22, 2  ;;  %vm982_vm11 = vcmp.lt.s32.totalorder %v981_v22, 2 }
 0x15b   :  { %v953_v37 = vor.u32 4788187, %v952_v52  ;;  %v956_v35 = vcvt.s32.f32 %v949_v9 }
 0x15d   :  { %v954_v45 = vand.u32 2147483647, %v953_v37 }
 0x15f   :  { %v957_v17 = vmul.f32 %v956_v35, %v954_v45 }
 0x161   :  { %v958_v34 = vxor.u32 2147483648, %v957_v17 }
 0x163   :  { %v959_v8 = vsel %vm838_vm7, %v958_v34, %v957_v17 }
 0x164   :  { %v962_v42 = vsel %vm837_vm8, %v1090_v19, %v959_v8 }
 0x165   :  { %v964_v55 = vmul.f32 %v962_v42, %v962_v42 }
 0x167   :  { %v965_v20 = vmul.f32 -0.001358992, %v964_v55  ;;  %v972_v5 = vmul.f32 -0.00019511016, %v964_v55 }
 0x169   :  { %v966_v3 = vadd.f32 0.041655596, %v965_v20  ;;  %v973_v21 = vadd.f32 0.008332121, %v972_v5 }
 0x16b   :  { %v967_v47 = vmul.f32 %v966_v3, %v964_v55  ;;  %v974_v10 = vmul.f32 %v973_v21, %v964_v55 }
 0x16d   :  { %v968_v41 = vadd.f32 -0.4999988, %v967_v47  ;;  %v975_v2 = vadd.f32 -0.16666654, %v974_v10 }
 0x16f   :  { %v969_v28 = vmul.f32 %v968_v41, %v964_v55  ;;  %v976_v27 = vmul.f32 %v975_v2, %v964_v55 }
 0x171   :  { %v970_v53 = vadd.f32 1.0, %v969_v28  ;;  %v977_v6 = vadd.f32 1.0, %v976_v27 }
 0x173   :  { %v978_v51 = vmul.f32 %v977_v6, %v962_v42  ;;  %v987_v16 = vxor.u32 2147483648, %v970_v53 }
 0x175   :  { %v984_v36 = vxor.u32 2147483648, %v978_v51  ;;  %v988_v33 = vsel %vm986_vm10, %v987_v16, %v978_v51 }
 0x177   :  { %v985_v24 = vsel %vm983_vm9, %v970_v53, %v984_v36 }
 0x178   :  { %v989_v0 = vsel %vm982_vm11, %v985_v24, %v988_v33 }
 0x179   :  { %v990_v13 = vsel %vm979_vm12, nan, %v989_v0 }
 0x17a   :  { %v996_v44 = vsel %vm60_vm6, %v990_v13, %v1090_v19 }
 0x17b   :  { %1002 = vst [vmem:[%s1772_s3 + $0x28] sm:$0xf] %v996_v44 }
 0x17c   :  { %1008 = vst [vmem:[%s1772_s3 + $0x58] sm:$0xf] %v996_v44 }

</bundles_post_ra>
